<compile_context>
chip_gen: v6e
topology: v6e:2x2x1
jax: 0.10.0
libtpu: 0.0.40
codegen_flags: <defaults>
</compile_context>

<pallas_src>
import functools
import math

import jax
import jax.numpy as jnp
from jax.experimental import pallas as pl
from jax.experimental.pallas import tpu as pltpu


def _round_up(x, m):
    return ((x + m - 1) // m) * m


def _topk_moe_kernel(x_ref, gate_ref, w12_ref, b12_ref, wc_ref, bc_ref,
                     o_ref, *, hidden_dim):
    """One (row_tile, expert) grid step: out += gate_e * expert_e(x_tile)."""
    e = pl.program_id(1)

    @pl.when(e == 0)
    def _():
        o_ref[...] = jnp.zeros_like(o_ref)

    x = x_ref[...]                                       # (TM, D) bf16

    # Fused ln_1|ln_2 matmul: bf16 MXU, f32 accumulation, resident weights.
    h12 = jnp.dot(x, w12_ref[e],
                  preferred_element_type=jnp.float32) + b12_ref[e]  # (TM, 2H) f32
    h1 = h12[:, :hidden_dim]
    h2 = h12[:, hidden_dim:]

    # SwiGLU in f32 (v5e VPU/EUP have no bf16 path); sigmoid via EUP approx.
    sig = pl.reciprocal(1.0 + jnp.exp(-h2), approx=True)
    h = h1 * (h2 * sig)                                  # (TM, H) f32

    # c_proj: bf16 MXU, f32 accumulation.
    y = jnp.dot(h.astype(jnp.bfloat16), wc_ref[e],
                preferred_element_type=jnp.float32) + bc_ref[e]     # (TM, D) f32

    # gate_ref is already the (TM, 1) weight column for expert e (0 if not
    # routed) -> no in-kernel iota/compare/cross-lane reduce.
    o_ref[...] += gate_ref[...] * y


def topk_moe_forward(x2d, kernel_params, *, tile_m_max=1024):
    """x2d: (M, n_embd) -> (M, n_embd) f32. k=2 top-k routing over E experts."""
    M, D = x2d.shape
    wg = kernel_params["wg"]        # (D, E)   f32
    w12 = kernel_params["w12"]      # (E, D, 2H) bf16
    b12 = kernel_params["b12"]      # (E, 1, 2H) f32
    wc = kernel_params["wc"]        # (E, H, D)  bf16
    bc = kernel_params["bc"]        # (E, 1, D)  f32
    E = wg.shape[1]
    H = wc.shape[1]

    tile_m = min(tile_m_max, _round_up(M, 8))
    M_pad = _round_up(M, tile_m)
    x_f32 = x2d.astype(jnp.float32)
    if M_pad != M:
        x_f32 = jnp.pad(x_f32, ((0, M_pad - M), (0, 0)))
    n_tiles = M_pad // tile_m

    # ---- gating in plain JAX (tiny): dense (E, M_pad, 1) top-2 softmax ----
    logits = x_f32 @ wg                                   # (M_pad, E)
    top_vals, top_idx = jax.lax.top_k(logits, 2)
    top_w = jax.nn.softmax(top_vals, axis=-1)             # (M_pad, 2)
    gate_dense = (jax.nn.one_hot(top_idx, E, dtype=jnp.float32)
                  * top_w[..., None]).sum(axis=1)         # (M_pad, E)
    gate_t = jnp.transpose(gate_dense)[:, :, None]        # (E, M_pad, 1)

    x_bf = x_f32.astype(jnp.bfloat16)

    # Resident weights are loaded once; per-tile traffic is x/gate/out only.
    weight_bytes = (w12.size + wc.size) * 2 + (b12.size + bc.size) * 4
    cost = pl.CostEstimate(
        flops=M_pad * E * 6 * D * H,
        transcendentals=M_pad * E * H,
        bytes_accessed=(M_pad * D * 2          # x (bf16)
                        + M_pad * D * 4        # out (f32)
                        + E * M_pad * 4        # gate weights
                        + weight_bytes),       # weights, fetched once
    )

    # VMEM budget: resident weights (+ small biases), double-buffered x/out/
    # gate tiles, and the f32 intermediates of one tile. Explicit limit so
    # v5e's 16 MiB default is not the ceiling; stays below v7x's 64 MiB.
    vmem_limit = 48 * 1024 * 1024

    kernel = functools.partial(_topk_moe_kernel, hidden_dim=H)

    out = pl.pallas_call(
        kernel,
        out_shape=jax.ShapeDtypeStruct((M_pad, D), jnp.float32),
        grid=(n_tiles, E),
        in_specs=[
            pl.BlockSpec((tile_m, D), lambda i, e: (i, 0)),           # x row tile
            pl.BlockSpec((None, tile_m, 1), lambda i, e: (e, i, 0)),  # gate col (TM,1)
            pl.BlockSpec((E, D, 2 * H), lambda i, e: (0, 0, 0)),      # W1|W2 resident
            pl.BlockSpec((E, 1, 2 * H), lambda i, e: (0, 0, 0)),      # b1|b2 resident
            pl.BlockSpec((E, H, D), lambda i, e: (0, 0, 0)),          # Wc resident
            pl.BlockSpec((E, 1, D), lambda i, e: (0, 0, 0)),          # bc resident
        ],
        out_specs=pl.BlockSpec((tile_m, D), lambda i, e: (i, 0)),
        compiler_params=pltpu.CompilerParams(
            dimension_semantics=("parallel", "arbitrary"),
            vmem_limit_bytes=vmem_limit),
        cost_estimate=cost,
    )(x_bf, gate_t, w12, b12, wc, bc)

    return out[:M]


class TopKMoEPallas:
    """JAX/Pallas equivalent of the PyTorch TopKMoE (k=2 routing, SwiGLU experts)."""

    def __init__(self, key, n_embd=128, num_experts=8, k=2):
        assert k == 2, "kernel implements the config default k = 2"
        self.n_embd = n_embd
        self.hidden_dim = 4 * n_embd
        self.num_experts = num_experts
        self.k = k
        D, H, E = n_embd, self.hidden_dim, num_experts
        keys = jax.random.split(key, 7)

        def uni(k_, shape, fan_in):
            bound = 1.0 / math.sqrt(fan_in)
            return jax.random.uniform(k_, shape, jnp.float32, -bound, bound)

        # f32 "master" weights, stored transposed vs PyTorch so kernel does x @ W.
        self.params = dict(
            wg=uni(keys[0], (D, E), D),        # gate_linear (bias=False)
            w1=uni(keys[1], (E, D, H), D),     # expert.ln_1
            b1=uni(keys[2], (E, 1, H), D),
            w2=uni(keys[3], (E, D, H), D),     # expert.ln_2
            b2=uni(keys[4], (E, 1, H), D),
            wc=uni(keys[5], (E, H, D), H),     # expert.c_proj
            bc=uni(keys[6], (E, 1, D), H),
        )
        # Pre-packed kernel weights: W1|W2 fused, matmul inputs in bf16.
        self.kernel_params = dict(
            wg=self.params["wg"],
            w12=jnp.concatenate([self.params["w1"], self.params["w2"]],
                                axis=-1).astype(jnp.bfloat16),        # (E, D, 2H)
            b12=jnp.concatenate([self.params["b1"], self.params["b2"]],
                                axis=-1).astype(jnp.float32),         # (E, 1, 2H)
            wc=self.params["wc"].astype(jnp.bfloat16),                # (E, H, D)
            bc=self.params["bc"].astype(jnp.float32),                 # (E, 1, D)
        )

    def __call__(self, x):
        B, S, D = x.shape
        x2d = x.reshape(B * S, D)
        out = topk_moe_forward(x2d, self.kernel_params)
        return out.reshape(B, S, D)


def topk_moe_reference(x2d, params, k=2):
    """Pure-JAX reference mirroring the kernel's bf16-matmul / f32-accumulate path."""
    x = x2d.astype(jnp.float32)
    logits = x @ params["wg"]                             # (M, E)
    top_vals, top_idx = jax.lax.top_k(logits, k)
    top_w = jax.nn.softmax(top_vals, axis=-1)
    E = params["wg"].shape[1]
    x_bf = x.astype(jnp.bfloat16)
    out = jnp.zeros((x.shape[0], params["wc"].shape[-1]), jnp.float32)
    for e in range(E):
        h1 = jnp.dot(x_bf, params["w1"][e].astype(jnp.bfloat16),
                     preferred_element_type=jnp.float32) + params["b1"][e]
        h2 = jnp.dot(x_bf, params["w2"][e].astype(jnp.bfloat16),
                     preferred_element_type=jnp.float32) + params["b2"][e]
        h = h1 * (h2 * jax.nn.sigmoid(h2))
        y = jnp.dot(h.astype(jnp.bfloat16), params["wc"][e].astype(jnp.bfloat16),
                    preferred_element_type=jnp.float32) + params["bc"][e]
        w_e = jnp.sum(jnp.where(top_idx == e, top_w, 0.0), axis=-1, keepdims=True)
        out = out + w_e * y
    return out


if __name__ == "__main__":
    key = jax.random.PRNGKey(0)
    pkey, xkey = jax.random.split(key)

    n_embd, num_experts, k = 128, 8, 2
    batch, seq = 2, 8

    model = TopKMoEPallas(pkey, n_embd=n_embd, num_experts=num_experts, k=k)
    x = jax.random.normal(xkey, (batch, seq, n_embd), dtype=jnp.float32)

    y = model(x)
    jax.block_until_ready(y)

    ref = topk_moe_reference(x.reshape(-1, n_embd), model.params, k=k)
    assert y.shape == (batch, seq, n_embd)
    err = float(jnp.max(jnp.abs(y.reshape(-1, n_embd) - ref)))
    # bf16 MXU inputs with f32 accumulation (+ approx EUP sigmoid) -> ~1e-2 tol.
    assert jnp.allclose(y.reshape(-1, n_embd), ref, atol=2e-2, rtol=2e-2), err

    print("KERNEL_OK")
</pallas_src>

<mosaic_0001>
module attributes {stable_mosaic.version = 11 : i64} {
  func.func @_topk_moe_kernel(%arg0: i32, %arg1: i32, %arg2: memref<16x128xbf16, #tpu.memory_space<vmem>>, %arg3: memref<1x16x1xf32, #tpu.memory_space<vmem>>, %arg4: memref<8x128x1024xbf16, #tpu.memory_space<vmem>>, %arg5: memref<8x1x1024xf32, #tpu.memory_space<vmem>>, %arg6: memref<8x512x128xbf16, #tpu.memory_space<vmem>>, %arg7: memref<8x1x128xf32, #tpu.memory_space<vmem>>, %arg8: memref<16x128xf32, #tpu.memory_space<vmem>>) attributes {dimension_semantics = [#tpu.dimension_semantics<parallel>, #tpu.dimension_semantics<arbitrary>], iteration_bounds = array<i64: 1, 8>, scalar_prefetch = 0 : i64, scratch_operands = 0 : i64, tpu.core_type = #tpu.core_type<tc>, window_params = [{transform_indices = @transform_0, window_bounds = array<i64: 16, 128>}, {transform_indices = @transform_1, window_bounds = array<i64: 1, 16, 1>}, {pipeline_mode = #tpu.pipeline_mode<synchronous>, transform_indices = @transform_2, window_bounds = array<i64: 8, 128, 1024>}, {pipeline_mode = #tpu.pipeline_mode<synchronous>, transform_indices = @transform_3, window_bounds = array<i64: 8, 1, 1024>}, {pipeline_mode = #tpu.pipeline_mode<synchronous>, transform_indices = @transform_4, window_bounds = array<i64: 8, 512, 128>}, {pipeline_mode = #tpu.pipeline_mode<synchronous>, transform_indices = @transform_5, window_bounds = array<i64: 8, 1, 128>}, {transform_indices = @transform_6, window_bounds = array<i64: 16, 128>}]} {
    %c0_i32 = arith.constant 0 : i32
    %0 = arith.cmpi eq, %arg1, %c0_i32 : i32
    %1 = arith.extui %0 : i1 to i32
    %c0_i32_0 = arith.constant 0 : i32
    %2 = arith.cmpi ne, %1, %c0_i32_0 : i32
    scf.if %2 {
      %cst_20 = arith.constant 0.000000e+00 : f32
      %40 = vector.broadcast %cst_20 : f32 to vector<16x128xf32>
      %c0_21 = arith.constant 0 : index
      %c0_22 = arith.constant 0 : index
      %41 = vector.load %arg8[%c0_21, %c0_22] : memref<16x128xf32, #tpu.memory_space<vmem>>, vector<16x128xf32>
      tpu.vector_store %arg8[%c0_21, %c0_22], %40 {strides = array<i32>} : memref<16x128xf32, #tpu.memory_space<vmem>>, vector<16x128xf32>,
    } else {
    }
    %c0 = arith.constant 0 : index
    %c0_1 = arith.constant 0 : index
    %3 = vector.load %arg2[%c0, %c0_1] : memref<16x128xbf16, #tpu.memory_space<vmem>>, vector<16x128xbf16>
    %4 = arith.index_cast %arg1 : i32 to index
    %c0_2 = arith.constant 0 : index
    %c0_3 = arith.constant 0 : index
    %5 = vector.load %arg4[%4, %c0_2, %c0_3] : memref<8x128x1024xbf16, #tpu.memory_space<vmem>>, vector<1x128x1024xbf16>
    %6 = vector.shape_cast %5 : vector<1x128x1024xbf16> to vector<128x1024xbf16>
    %cst = arith.constant dense<0.000000e+00> : vector<16x1024xf32>
    %7 = tpu.matmul %3, %6, %cst {dimension_numbers = #tpu.dot_dimension_numbers<[1], [0], [0], [1], [0, 0, 1, 1], [], []>} : vector<16x128xbf16>, vector<128x1024xbf16>, vector<16x1024xf32> -> vector<16x1024xf32>
    %8 = arith.index_cast %arg1 : i32 to index
    %c0_4 = arith.constant 0 : index
    %c0_5 = arith.constant 0 : index
    %9 = vector.load %arg5[%8, %c0_4, %c0_5] : memref<8x1x1024xf32, #tpu.memory_space<vmem>>, vector<1x1x1024xf32>
    %10 = vector.shape_cast %9 : vector<1x1x1024xf32> to vector<1x1024xf32>
    %11 = vector.broadcast %10 : vector<1x1024xf32> to vector<16x1024xf32>
    %12 = arith.addf %7, %11 : vector<16x1024xf32>
    %13 = vector.extract_strided_slice %12 {offsets = [0, 0], sizes = [16, 512], strides = [1, 1]} : vector<16x1024xf32> to vector<16x512xf32>
    %14 = vector.extract_strided_slice %12 {offsets = [0, 512], sizes = [16, 512], strides = [1, 1]} : vector<16x1024xf32> to vector<16x512xf32>
    %cst_6 = arith.constant 0.000000e+00 : f32
    %15 = vector.broadcast %cst_6 : f32 to vector<16x512xf32>
    %16 = arith.subf %15, %14 : vector<16x512xf32>
    %17 = math.exp %16 : vector<16x512xf32>
    %cst_7 = arith.constant 1.000000e+00 : f32
    %18 = vector.broadcast %cst_7 : f32 to vector<16x512xf32>
    %19 = arith.addf %18, %17 : vector<16x512xf32>
    %20 = tpu.reciprocal %19 {approx = true} : vector<16x512xf32> -> vector<16x512xf32>
    %21 = arith.mulf %14, %20 : vector<16x512xf32>
    %22 = arith.mulf %13, %21 : vector<16x512xf32>
    %23 = arith.truncf %22 : vector<16x512xf32> to vector<16x512xbf16>
    %24 = arith.index_cast %arg1 : i32 to index
    %c0_8 = arith.constant 0 : index
    %c0_9 = arith.constant 0 : index
    %25 = vector.load %arg6[%24, %c0_8, %c0_9] : memref<8x512x128xbf16, #tpu.memory_space<vmem>>, vector<1x512x128xbf16>
    %26 = vector.shape_cast %25 : vector<1x512x128xbf16> to vector<512x128xbf16>
    %cst_10 = arith.constant dense<0.000000e+00> : vector<16x128xf32>
    %27 = tpu.matmul %23, %26, %cst_10 {dimension_numbers = #tpu.dot_dimension_numbers<[1], [0], [0], [1], [0, 0, 1, 1], [], []>} : vector<16x512xbf16>, vector<512x128xbf16>, vector<16x128xf32> -> vector<16x128xf32>
    %28 = arith.index_cast %arg1 : i32 to index
    %c0_11 = arith.constant 0 : index
    %c0_12 = arith.constant 0 : index
    %29 = vector.load %arg7[%28, %c0_11, %c0_12] : memref<8x1x128xf32, #tpu.memory_space<vmem>>, vector<1x1x128xf32>
    %30 = vector.shape_cast %29 : vector<1x1x128xf32> to vector<1x128xf32>
    %31 = vector.broadcast %30 : vector<1x128xf32> to vector<16x128xf32>
    %32 = arith.addf %27, %31 : vector<16x128xf32>
    %c0_13 = arith.constant 0 : index
    %c0_14 = arith.constant 0 : index
    %33 = vector.load %arg8[%c0_13, %c0_14] : memref<16x128xf32, #tpu.memory_space<vmem>>, vector<16x128xf32>
    %c0_15 = arith.constant 0 : index
    %c0_16 = arith.constant 0 : index
    %c0_17 = arith.constant 0 : index
    %34 = vector.load %arg3[%c0_15, %c0_16, %c0_17] : memref<1x16x1xf32, #tpu.memory_space<vmem>>, vector<1x16x1xf32>
    %35 = vector.shape_cast %34 : vector<1x16x1xf32> to vector<16x1xf32>
    %36 = vector.broadcast %35 : vector<16x1xf32> to vector<16x128xf32>
    %37 = arith.mulf %36, %32 : vector<16x128xf32>
    %38 = arith.addf %33, %37 : vector<16x128xf32>
    %c0_18 = arith.constant 0 : index
    %c0_19 = arith.constant 0 : index
    %39 = vector.load %arg8[%c0_18, %c0_19] : memref<16x128xf32, #tpu.memory_space<vmem>>, vector<16x128xf32>
    tpu.vector_store %arg8[%c0_18, %c0_19], %38 {strides = array<i32>} : memref<16x128xf32, #tpu.memory_space<vmem>>, vector<16x128xf32>,
    return
  }
  func.func @transform_0(%arg0: i32, %arg1: i32) -> (i32, i32) {
    %c0_i32 = arith.constant 0 : i32
    %c0_i32_0 = arith.constant 0 : i32
    return %arg0, %c0_i32 : i32, i32
  }
  func.func @transform_1(%arg0: i32, %arg1: i32) -> (i32, i32, i32) {
    %c0_i32 = arith.constant 0 : i32
    %c0_i32_0 = arith.constant 0 : i32
    return %arg1, %arg0, %c0_i32 : i32, i32, i32
  }
  func.func @transform_2(%arg0: i32, %arg1: i32) -> (i32, i32, i32) {
    %c0_i32 = arith.constant 0 : i32
    %c0_i32_0 = arith.constant 0 : i32
    %c0_i32_1 = arith.constant 0 : i32
    %c0_i32_2 = arith.constant 0 : i32
    return %c0_i32, %c0_i32_0, %c0_i32_1 : i32, i32, i32
  }
  func.func @transform_3(%arg0: i32, %arg1: i32) -> (i32, i32, i32) {
    %c0_i32 = arith.constant 0 : i32
    %c0_i32_0 = arith.constant 0 : i32
    %c0_i32_1 = arith.constant 0 : i32
    %c0_i32_2 = arith.constant 0 : i32
    return %c0_i32, %c0_i32_0, %c0_i32_1 : i32, i32, i32
  }
  func.func @transform_4(%arg0: i32, %arg1: i32) -> (i32, i32, i32) {
    %c0_i32 = arith.constant 0 : i32
    %c0_i32_0 = arith.constant 0 : i32
    %c0_i32_1 = arith.constant 0 : i32
    %c0_i32_2 = arith.constant 0 : i32
    return %c0_i32, %c0_i32_0, %c0_i32_1 : i32, i32, i32
  }
  func.func @transform_5(%arg0: i32, %arg1: i32) -> (i32, i32, i32) {
    %c0_i32 = arith.constant 0 : i32
    %c0_i32_0 = arith.constant 0 : i32
    %c0_i32_1 = arith.constant 0 : i32
    %c0_i32_2 = arith.constant 0 : i32
    return %c0_i32, %c0_i32_0, %c0_i32_1 : i32, i32, i32
  }
  func.func @transform_6(%arg0: i32, %arg1: i32) -> (i32, i32) {
    %c0_i32 = arith.constant 0 : i32
    %c0_i32_0 = arith.constant 0 : i32
    return %arg0, %c0_i32 : i32, i32
  }
}

</mosaic_0001>

<bundles_post_ra>
// kernel: tpu_custom_call.1
= control target key start
LH: loop header
LB: loop body
LE: loop exit
PB: predicated region body
PF: predicated region fallthrough
CT: control target
= control target key end

     0   :  { %11 = vsyncpa [#allocation3], 0  ;;  %s2427_s0 = inlined_call_operand.hbm [shape: bf16[16,128], index: 0, kind: input, shape index: {}]   ;;  %s2428_s1 = inlined_call_operand.vmem [shape: f32[8,16,1], index: 1, kind: input, shape index: {}]   ;;  %s2429_s2 = inlined_call_operand.hbm [shape: bf16[8,128,1024], index: 2, kind: input, shape index: {}]   ;;  %s2430_s3 = inlined_call_operand.hbm [shape: f32[8,1,1024], index: 3, kind: input, shape index: {}]   ;;  %s2431_s4 = inlined_call_operand.hbm [shape: bf16[8,512,128], index: 4, kind: input, shape index: {}]   ;;  %s2432_s5 = inlined_call_operand.hbm [shape: f32[8,1,128], index: 5, kind: input, shape index: {}]   ;;  %s2433_s6 = inlined_call_operand.hbm [shape: f32[16,128], index: 6, kind: output, shape index: {}]  }
   0x1   :  { %12 = vsyncpa [#allocation6], 0 }
   0x2   :  { %13 = vsyncpa [#allocation9], 0 }
   0x3   :  { %14 = vsyncpa [#allocation4], 0  ;;  %s2106_s21 = smov 0   ;;  %s2108_s22 = smov 0  }
   0x4   :  { %s2110_s23 = smov 0  }
   0x5 LB: > { %s2053_s24 = smov [#allocation5]   ;;  %s1528_s26 = sadd.s32 4294967295, %s2051_s23   ;;  %s2051_s23 = sphi %s2110_s23, %s20_s23   ;;  %s2047_s22 = sphi %s2108_s22, %s2445_s22   ;;  %s2043_s21 = sphi %s2106_s21, %s2444_s21  }
   0x6   : > { %s229_s25 = sshll.u32 %s2053_s24, 4  ;;  %p1529_p0 = scmp.ge.s32.totalorder %s2051_s23, 1  ;;  %s230_s25 = int_to_ptr.vmem [resolvable:$true] %s229_s25 }
   0x7   : > { %p201_p1 = scmp.lt.s32.totalorder %s2051_s23, 9  ;;  %p2126_p2 = scmp.eq.s32.totalorder %s1528_s26, 0 }
   0x8   : > { %s2054_s30 = smov [#allocation8]   ;;  %s1870_s9 = scalar_lea.vmem %s230_s25, 65536 }
   0x9   : > { %s2437_s27 = scalar_select %p2126_p2, 1, 0 }
   0xa   : > { %p2130_p3 = pnand %p1529_p0, %p201_p1  ;;  %s255_s7 = sshll.u32 %s2054_s30, 4  ;;  %s256_s7 = int_to_ptr.vmem [resolvable:$true] %s255_s7 }
   0xb   : > { %p1871_p7 = scmp.ne.s32.totalorder %s230_s25, %s1870_s9  ;;  %p1878_p10 = scmp.lt.s32.totalorder %s230_s25, %s230_s25 }
   0xc   : > { %s2438_s28 = scalar_select %p2130_p3, 1, 0 }
   0xd   : > { %p1723_p4 = pneg %p2130_p3  ;;  %p1879_p11 = scmp.lt.s32.totalorder %s1870_s9, %s1870_s9 }
   0xf   : > { %p2138_p5 = pnand %p2126_p2, %p1723_p4  ;;  %p1880_p12 = por %p1879_p11, %p1878_p10 }
  0x11   : > { %p2144_p6 = pneg %p2138_p5 }
  0x13   : > { %p1873_p8 = pnand %p1871_p7, %p2144_p6 }
  0x15   : > { %p1874_p9 = pneg %p1873_p8 }
  0x17   : > { %p1881_p13 = pnand %p1880_p12, %p1874_p9 }
  0x19   : > { %1884 = shalt.err (!%p1881_p13)
}
  0x1a   : > { %s2055_s10 = smov 512   ;;  %s2056_s11 = smov 32  }
  0x1b   : > { %1729 = dma.hbm_to_vmem [thread:$0]  (!%p2138_p5), %s2429_s2, 65536, %s230_s25, [#allocation6], %s2055_s10, %s2055_s10, %s2056_s11  }
  0x1c   : > { %s1896_s14 = scalar_lea.vmem %s256_s7, 32768  ;;  %p1904_p7 = scmp.lt.s32.totalorder %s256_s7, %s256_s7 }
  0x1d   : > { %p1897_p0 = scmp.ne.s32.totalorder %s256_s7, %s1896_s14  ;;  %p1905_p8 = scmp.lt.s32.totalorder %s1896_s14, %s1896_s14 }
  0x1f   : > { %p1899_p1 = pnand %p1897_p0, %p2144_p6  ;;  %p1906_p2 = por %p1905_p8, %p1904_p7 }
  0x21   : > { %p1900_p4 = pneg %p1899_p1 }
  0x23   : > { %p1907_p10 = pnand %p1906_p2, %p1900_p4 }
  0x25   : > { %1910 = shalt.err (!%p1907_p10)
}
  0x26   : > { %s2057_s15 = smov 64   ;;  %s2058_s16 = smov 4  }
  0x27   : > { %1735 = dma.hbm_to_vmem [thread:$0]  (!%p2138_p5), %s2431_s4, 32768, %s256_s7, [#allocation9], %s2057_s15, %s2057_s15, %s2058_s16  }
  0x28   : > { %s29_s19 = sadd.s32 1, %s2047_s22  ;;  %s2059_s20 = smov [#allocation2]  }
  0x29   : > { %p30_p9 = scmp.ge.s32.totalorder %s29_s19, 8  ;;  %s216_s24 = sshll.u32 %s2059_s20, 4  ;;  %s217_s24 = int_to_ptr.vmem [resolvable:$true] %s216_s24 }
  0x2a   : > { %s2060_s25 = smov [#allocation7]   ;;  %s1922_s9 = scalar_lea.vmem %s217_s24, 128 }
  0x2b   : > { %s2447_s19 = smov (%p30_p9, %s29_s19), 0  ;;  %s242_s30 = sshll.u32 %s2060_s25, 4  ;;  %s243_s30 = int_to_ptr.vmem [resolvable:$true] %s242_s30 }
  0x2c   : > { %p1923_p2 = scmp.ne.s32.totalorder %s217_s24, %s1922_s9  ;;  %p1930_p13 = scmp.lt.s32.totalorder %s217_s24, %s217_s24 }
  0x2d   : > { %p1931_p0 = scmp.lt.s32.totalorder %s1922_s9, %s1922_s9 }
  0x2e   : > { %p1925_p11 = pnand %p1923_p2, %p2144_p6 }
  0x2f   : > { %p1932_p1 = por %p1931_p0, %p1930_p13 }
  0x30   : > { %p1926_p12 = pneg %p1925_p11 }
  0x32   : > { %p1933_p4 = pnand %p1932_p1, %p1926_p12 }
  0x34   : > { %1936 = shalt.err (!%p1933_p4)
}
  0x35   : > { %1726 = dma.hbm_to_vmem [thread:$0]  (!%p2138_p5), %s2427_s0, 128, %s217_s24, [#allocation3], %s2057_s15, %s2057_s15, %s2058_s16  }
  0x36   : > { %s1948_s11 = scalar_lea.vmem %s243_s30, 1024  ;;  %p1956_p9 = scmp.lt.s32.totalorder %s243_s30, %s243_s30 }
  0x37   : > { %p1949_p7 = scmp.ne.s32.totalorder %s243_s30, %s1948_s11  ;;  %p1957_p2 = scmp.lt.s32.totalorder %s1948_s11, %s1948_s11 }
  0x39   : > { %p1951_p8 = pnand %p1949_p7, %p2144_p6  ;;  %p1958_p11 = por %p1957_p2, %p1956_p9 }
  0x3b   : > { %p1952_p10 = pneg %p1951_p8 }
  0x3d   : > { %p1959_p3 = pnand %p1958_p11, %p1952_p10 }
  0x3f   : > { %1962 = shalt.err (!%p1959_p3)
}
  0x40   : > { %s2061_s12 = smov 128   ;;  %s2062_s13 = smov 8  }
  0x41   : > { %1732 = dma.hbm_to_vmem [thread:$0]  (!%p2138_p5), %s2430_s3, 1024, %s243_s30, [#allocation6], %s2061_s12, %s2061_s12, %s2062_s13  }
  0x42   : > { %s2063_s15 = smov [#allocation10]  }
  0x43   : > { %s268_s16 = sshll.u32 %s2063_s15, 4  ;;  %s269_s16 = int_to_ptr.vmem [resolvable:$true] %s268_s16 }
  0x44   : > { %s1974_s18 = scalar_lea.vmem %s269_s16, 128  ;;  %p1982_p1 = scmp.lt.s32.totalorder %s269_s16, %s269_s16 }
  0x45   : > { %p1975_p12 = scmp.ne.s32.totalorder %s269_s16, %s1974_s18  ;;  %p1983_p4 = scmp.lt.s32.totalorder %s1974_s18, %s1974_s18 }
  0x47   : > { %p1977_p13 = pnand %p1975_p12, %p2144_p6  ;;  %p1984_p3 = por %p1983_p4, %p1982_p1 }
  0x49   : > { %p1978_p0 = pneg %p1977_p13 }
  0x4b   : > { %p1985_p7 = pnand %p1984_p3, %p1978_p0 }
  0x4d   : > { %1988 = shalt.err (!%p1985_p7)
}
  0x4e   : > { %s2064_s20 = smov 16   ;;  %s2065_s24 = smov 1  }
  0x4f   : > { %1738 = dma.hbm_to_vmem [thread:$0]  (!%p2138_p5), %s2432_s5, 128, %s269_s16, [#allocation9], %s2064_s20, %s2064_s20, %s2065_s24  }
  0x50   : > { %p2441_p8 = scmp.ne.s32.totalorder %s2438_s28, 0 }
  0x51   : > { %p2442_p10 = scmp.ne.s32.totalorder (!%p2441_p8), %s2437_s27, 0 }
  0x52   : > { %297 = sbr.rel (%p2441_p8) target bundleno = 629 (0x275), region = 44 }
  0x57   : > { %2026 = dma.done.wait (%p2442_p10), [#allocation3], 128  }
  0x58   : > { %2028 = vsyncadd (%p2442_p10), [#allocation3], 4294967168 }
  0x59   : > { %2030 = dma.done.wait (%p2442_p10), [#allocation6], 66560  }
  0x5a   : > { %2032 = vsyncadd (%p2442_p10), [#allocation6], 4294900736 }
  0x5b   : > { %2034 = dma.done.wait (%p2442_p10), [#allocation9], 32896  }
  0x5c   : > { %2036 = vsyncadd (%p2442_p10), [#allocation9], 4294934400  ;;  %p344_p5 = scmp.lt.s32.totalorder %s2043_s21, 7  ;;  %p1544_p6 = scmp.ne.s32.totalorder %s2043_s21, 0 }
  0x5e   : > { %s345_s28 = scalar_select %p344_p5, %s2043_s21, 7 }
  0x5f   : > { %358 = sbr.rel (%p1544_p6) target bundleno = 102 (0x66), region = 68 }
  0x60   : > { %s1652_s29 = sshll.u32 %s345_s28, 4 }
  0x61   : > { %s2205_s7 = scalar_lea.vmem %s2428_s1, %s1652_s29 }
  0x64   : > { %v2066_v0 = vmov 0.0  }
  0x65   : > { %359 = vst [vmem:[#allocation11] sm:$0xff] %v2066_v0  ;;  %360 = vst [vmem:[#allocation11 + $0x8] sm:$0xff] %v2066_v0 }
  0x66 PF: > { %s1653_s27 = sshll.u32 %s2043_s21, 9  ;;  %v2067_v1 = vmov 0   ;;  %s1654_s11 = sshll.u32 %s2043_s21, 8 }
  0x67   : > { %832 = vmatprep.mubr.bf16.mxu0 %v2067_v1  ;;  %875 = vmatprep.mubr.bf16.mxu1 %v2067_v1  ;;  %s2211_s10 = scalar_lea.vmem [#allocation5], %s1653_s27  ;;  %s2287_s12 = scalar_lea.vmem [#allocation8], %s1654_s11 }
  0x68   : > { %v422_v2 = vld [vmem:[%s2211_s10 + $0x1c0] sm:$0xff]  ;;  %v423_v4 = vld [vmem:[%s2211_s10 + $0x1c8] sm:$0xff]  ;;  %1793 = vset.pattern.permute.xlu0 %v2067_v1  ;;  %v424_v0 = vld [vmem:[%s2211_s10 + $0x1d0] sm:$0xff]  ;;  %s1547_s13 = sshll.u32 %s2043_s21, 3  ;;  %s1099_s17 = scalar_lea.vmem [#allocation10], %s2043_s21 }
  0x69   : > { %v426_v3 = vld [vmem:[%s2211_s10 + $0x1e0] sm:$0xff]  ;;  %v427_v6 = vld [vmem:[%s2211_s10 + $0x1e8] sm:$0xff]  ;;  %s431_s14 = scalar_lea.vmem [#allocation7], %s1547_s13  ;;  %s2068_s21 = smov [#allocation11]  }
  0x6a   : > { %v1606_v5 = vcombine.high %v422_v2, %v426_v3  ;;  %v1605_v7 = vcombine.low %v422_v2, %v426_v3  ;;  %v414_v8 = vld [vmem:[%s2211_s10 + $0x180] sm:$0xff]  ;;  %v1608_v10 = vcombine.high %v423_v4, %v427_v6  ;;  %v1607_v11 = vcombine.low %v423_v4, %v427_v6  ;;  %v415_v13 = vld [vmem:[%s2211_s10 + $0x188] sm:$0xff]  ;;  %v428_v2 = vld [vmem:[%s2211_s10 + $0x1f0] sm:$0xff]  ;;  %s1410_s15 = sshll.u32 %s2068_s21, 4  ;;  %p2403_p9 = scmp.eq.s32.totalorder %s1528_s26, 7  ;;  %s1411_s15 = int_to_ptr.vmem [resolvable:$true] %s1410_s15 }
  0x6b   : > { %v418_v9 = vld [vmem:[%s2211_s10 + $0x1a0] sm:$0xff]  ;;  %v419_v14 = vld [vmem:[%s2211_s10 + $0x1a8] sm:$0xff]  ;;  %v425_v3 = vld [vmem:[%s2211_s10 + $0x1d8] sm:$0xff]  ;;  %s1989_s18 = scalar_lea.vmem %s1411_s15, 256  ;;  %p1996_p13 = scmp.lt.s32.totalorder %s1411_s15, %s1411_s15 }
  0x6c   : > { %v1598_v12 = vcombine.high %v414_v8, %v418_v9  ;;  %v406_v15 = vld [vmem:[%s2211_s10 + $0x140] sm:$0xff]  ;;  %800 = vmatprep.subr.bf16.mxu0 %v1606_v5  ;;  %v1600_v16 = vcombine.high %v415_v13, %v419_v14  ;;  %v407_v18 = vld [vmem:[%s2211_s10 + $0x148] sm:$0xff]  ;;  %843 = vmatprep.subr.bf16.mxu1 %v1608_v10  ;;  %v1597_v20 = vcombine.low %v414_v8, %v418_v9  ;;  %v429_v4 = vld [vmem:[%s2211_s10 + $0x1f8] sm:$0xff]  ;;  %p1990_p2 = scmp.ne.s32.totalorder %s1411_s15, %s1989_s18  ;;  %p1997_p0 = scmp.lt.s32.totalorder %s1989_s18, %s1989_s18 }
  0x6d   : > { %v410_v17 = vld [vmem:[%s2211_s10 + $0x160] sm:$0xff]  ;;  %v411_v19 = vld [vmem:[%s2211_s10 + $0x168] sm:$0xff]  ;;  %801 = vmatpush1.bf16.msra.mxu0 %v1605_v7  ;;  %844 = vmatpush1.bf16.msra.mxu1 %v1607_v11  ;;  %v1599_v21 = vcombine.low %v415_v13, %v419_v14  ;;  %v1610_v7 = vcombine.high %v424_v0, %v428_v2  ;;  %v1612_v8 = vcombine.high %v425_v3, %v429_v4  ;;  %v416_v9 = vld [vmem:[%s2211_s10 + $0x190] sm:$0xff] }
  0x6e   : > { %802 = vmatprep.subr.bf16.mxu0 %v1598_v12  ;;  %v1590_v22 = vcombine.high %v406_v15, %v410_v17  ;;  %845 = vmatprep.subr.bf16.mxu1 %v1600_v16  ;;  %v1592_v23 = vcombine.high %v407_v18, %v411_v19  ;;  %v398_v24 = vld [vmem:[%s2211_s10 + $0x100] sm:$0xff]  ;;  %v399_v26 = vld [vmem:[%s2211_s10 + $0x108] sm:$0xff]  ;;  %v1589_v28 = vcombine.low %v406_v15, %v410_v17  ;;  %v420_v10 = vld [vmem:[%s2211_s10 + $0x1b0] sm:$0xff]  ;;  %p1991_p11 = pnand %p1990_p2, %p2403_p9  ;;  %p1998_p1 = por %p1997_p0, %p1996_p13 }
  0x6f   : > { %v402_v25 = vld [vmem:[%s2211_s10 + $0x120] sm:$0xff]  ;;  %v403_v27 = vld [vmem:[%s2211_s10 + $0x128] sm:$0xff]  ;;  %v1591_v29 = vcombine.low %v407_v18, %v411_v19  ;;  %v417_v12 = vld [vmem:[%s2211_s10 + $0x198] sm:$0xff]  ;;  %v1609_v14 = vcombine.low %v424_v0, %v428_v2  ;;  %v1611_v15 = vcombine.low %v425_v3, %v429_v4  ;;  %v1602_v16 = vcombine.high %v416_v9, %v420_v10 }
  0x70   : > { %v1582_v30 = vcombine.high %v398_v24, %v402_v25  ;;  %v1584_v31 = vcombine.high %v399_v26, %v403_v27  ;;  %v390_v32 = vld [vmem:[%s2211_s10 + $0xc0] sm:$0xff]  ;;  %v391_v34 = vld [vmem:[%s2211_s10 + $0xc8] sm:$0xff]  ;;  %v1581_v36 = vcombine.low %v398_v24, %v402_v25  ;;  %v1583_v37 = vcombine.low %v399_v26, %v403_v27  ;;  %v421_v13 = vld [vmem:[%s2211_s10 + $0x1b8] sm:$0xff]  ;;  %p1992_p12 = pneg %p1991_p11 }
  0x71   : > { %803 = vmatpush1.bf16.msra.mxu0 %v1597_v20  ;;  %846 = vmatpush1.bf16.msra.mxu1 %v1599_v21  ;;  %v394_v33 = vld [vmem:[%s2211_s10 + $0xe0] sm:$0xff]  ;;  %v395_v35 = vld [vmem:[%s2211_s10 + $0xe8] sm:$0xff]  ;;  %v1604_v17 = vcombine.high %v417_v12, %v421_v13  ;;  %v408_v18 = vld [vmem:[%s2211_s10 + $0x150] sm:$0xff] }
  0x72   : > { %804 = vmatprep.subr.bf16.mxu0 %v1590_v22  ;;  %847 = vmatprep.subr.bf16.mxu1 %v1592_v23  ;;  %v1574_v38 = vcombine.high %v390_v32, %v394_v33  ;;  %v1576_v39 = vcombine.high %v391_v34, %v395_v35  ;;  %v382_v40 = vld [vmem:[%s2211_s10 + $0x80] sm:$0xff]  ;;  %v383_v42 = vld [vmem:[%s2211_s10 + $0x88] sm:$0xff]  ;;  %v1573_v44 = vcombine.low %v390_v32, %v394_v33  ;;  %v412_v19 = vld [vmem:[%s2211_s10 + $0x170] sm:$0xff]  ;;  %p1999_p4 = pnand %p1998_p1, %p1992_p12 }
  0x73   : > { %v386_v41 = vld [vmem:[%s2211_s10 + $0xa0] sm:$0xff]  ;;  %v387_v43 = vld [vmem:[%s2211_s10 + $0xa8] sm:$0xff]  ;;  %v1575_v45 = vcombine.low %v391_v34, %v395_v35  ;;  %v409_v20 = vld [vmem:[%s2211_s10 + $0x158] sm:$0xff]  ;;  %v1601_v22 = vcombine.low %v416_v9, %v420_v10  ;;  %v1603_v23 = vcombine.low %v417_v12, %v421_v13  ;;  %v1594_v24 = vcombine.high %v408_v18, %v412_v19 }
  0x74   : > { %v1566_v46 = vcombine.high %v382_v40, %v386_v41  ;;  %v1568_v47 = vcombine.high %v383_v42, %v387_v43  ;;  %v374_v48 = vld [vmem:[%s2211_s10 + $0x40] sm:$0xff]  ;;  %v375_v50 = vld [vmem:[%s2211_s10 + $0x48] sm:$0xff]  ;;  %v1565_v52 = vcombine.low %v382_v40, %v386_v41  ;;  %v1567_v53 = vcombine.low %v383_v42, %v387_v43  ;;  %v413_v21 = vld [vmem:[%s2211_s10 + $0x178] sm:$0xff] }
  0x75   : > { %805 = vmatpush1.bf16.msra.mxu0 %v1589_v28  ;;  %848 = vmatpush1.bf16.msra.mxu1 %v1591_v29  ;;  %v378_v49 = vld [vmem:[%s2211_s10 + $0x60] sm:$0xff]  ;;  %v379_v51 = vld [vmem:[%s2211_s10 + $0x68] sm:$0xff]  ;;  %v1596_v25 = vcombine.high %v409_v20, %v413_v21  ;;  %v400_v26 = vld [vmem:[%s2211_s10 + $0x110] sm:$0xff] }
  0x76   : > { %806 = vmatprep.subr.bf16.mxu0 %v1582_v30  ;;  %849 = vmatprep.subr.bf16.mxu1 %v1584_v31  ;;  %v1558_v54 = vcombine.high %v374_v48, %v378_v49  ;;  %v1560_v55 = vcombine.high %v375_v50, %v379_v51  ;;  %v366_v56 = vld [vmem:[%s2211_s10] sm:$0xff]  ;;  %v367_v58 = vld [vmem:[%s2211_s10 + $0x8] sm:$0xff]  ;;  %v1557_v60 = vcombine.low %v374_v48, %v378_v49  ;;  %v404_v27 = vld [vmem:[%s2211_s10 + $0x130] sm:$0xff] }
  0x77   : > { %v370_v57 = vld [vmem:[%s2211_s10 + $0x20] sm:$0xff]  ;;  %v371_v59 = vld [vmem:[%s2211_s10 + $0x28] sm:$0xff]  ;;  %v1559_v61 = vcombine.low %v375_v50, %v379_v51  ;;  %v401_v28 = vld [vmem:[%s2211_s10 + $0x118] sm:$0xff]  ;;  %v1593_v30 = vcombine.low %v408_v18, %v412_v19  ;;  %v1595_v31 = vcombine.low %v409_v20, %v413_v21  ;;  %v1586_v32 = vcombine.high %v400_v26, %v404_v27 }
  0x78   : > { %v1550_v62 = vcombine.high %v366_v56, %v370_v57  ;;  %v1552_v63 = vcombine.high %v367_v58, %v371_v59  ;;  %v1549_v5 = vcombine.low %v366_v56, %v370_v57  ;;  %v1551_v6 = vcombine.low %v367_v58, %v371_v59  ;;  %v2252_v11 = vld [vmem:[#allocation2] sm:$0xff]   ;;  %v405_v29 = vld [vmem:[%s2211_s10 + $0x138] sm:$0xff]  ;;  %v392_v34 = vld [vmem:[%s2211_s10 + $0xd0] sm:$0xff] }
  0x79   : > { %807 = vmatpush1.bf16.msra.mxu0 %v1581_v36  ;;  %850 = vmatpush1.bf16.msra.mxu1 %v1583_v37  ;;  %v1588_v33 = vcombine.high %v401_v28, %v405_v29  ;;  %v396_v35 = vld [vmem:[%s2211_s10 + $0xf0] sm:$0xff]  ;;  %v393_v36 = vld [vmem:[%s2211_s10 + $0xd8] sm:$0xff]  ;;  %v1803_v12 = vld [vmem:[%s2287_s12 + $0x68] sm:$0xff]  }
  0x7a   : > { %808 = vmatprep.subr.bf16.mxu0 %v1574_v38  ;;  %851 = vmatprep.subr.bf16.mxu1 %v1576_v39  ;;  %v397_v37 = vld [vmem:[%s2211_s10 + $0xf8] sm:$0xff]  ;;  %v1585_v38 = vcombine.low %v400_v26, %v404_v27  ;;  %v1578_v39 = vcombine.high %v392_v34, %v396_v35  ;;  %v384_v41 = vld [vmem:[%s2211_s10 + $0x90] sm:$0xff]  ;;  %v1804_v13 = vld [vmem:[%s2287_s12 + $0xe8] sm:$0xff]  }
  0x7b   : > { %v1580_v40 = vcombine.high %v393_v36, %v397_v37  ;;  %v388_v42 = vld [vmem:[%s2211_s10 + $0xb0] sm:$0xff]  ;;  %v385_v43 = vld [vmem:[%s2211_s10 + $0x98] sm:$0xff]  ;;  %v1809_v18 = vld [vmem:[%s2287_s12 + $0x20] sm:$0xff]  }
  0x7c   : > { %v376_v49 = vld [vmem:[%s2211_s10 + $0x50] sm:$0xff]  ;;  %v377_v51 = vld [vmem:[%s2211_s10 + $0x58] sm:$0xff]  ;;  %v1810_v19 = vld [vmem:[%s2287_s12 + $0xa0] sm:$0xff]  }
  0x7d   : > { %809 = vmatpush1.bf16.msra.mxu0 %v1573_v44  ;;  %852 = vmatpush1.bf16.msra.mxu1 %v1575_v45  ;;  %v389_v44 = vld [vmem:[%s2211_s10 + $0xb8] sm:$0xff]  ;;  %v1577_v45 = vcombine.low %v392_v34, %v396_v35  ;;  %v380_v50 = vld [vmem:[%s2211_s10 + $0x70] sm:$0xff]  ;;  %v1825_v34 = vld [vmem:[%s2287_s12] sm:$0xff]  }
  0x7e   : > { %810 = vmatprep.subr.bf16.mxu0 %v1566_v46  ;;  %853 = vmatprep.subr.bf16.mxu1 %v1568_v47  ;;  %v1579_v46 = vcombine.low %v393_v36, %v397_v37  ;;  %v1570_v47 = vcombine.high %v384_v41, %v388_v42  ;;  %v1572_v48 = vcombine.high %v385_v43, %v389_v44  ;;  %v368_v57 = vld [vmem:[%s2211_s10 + $0x10] sm:$0xff]  ;;  %v369_v59 = vld [vmem:[%s2211_s10 + $0x18] sm:$0xff]  ;;  %v1826_v35 = vld [vmem:[%s2287_s12 + $0x80] sm:$0xff]  }
  0x7f   : > { %v372_v58 = vld [vmem:[%s2211_s10 + $0x30] sm:$0xff]  ;;  %v1795_v4 = vld [vmem:[%s2287_s12 + $0x78] sm:$0xff]   ;;  %v1383_v36 = vld [vmem:[%s2205_s7] sm:$0xff] }
  0x80   : > { %v1553_v2 = vcombine.low %v368_v57, %v372_v58  ;;  %v1800_v9 = vld [vmem:[%s2287_s12 + $0xf0] sm:$0xff]   ;;  %v1811_v20 = vld [vmem:[%s2287_s12 + $0x58] sm:$0xff]   ;;  %1387 = vperm.xlu0 %1793, %v1383_v36   ;;  %v1384_v37 = vld [vmem:[%s2205_s7 + $0x8] sm:$0xff] }
  0x81   : > { %811 = vmatpush1.bf16.msra.mxu0 %v1565_v52  ;;  %854 = vmatpush1.bf16.msra.mxu1 %v1567_v53  ;;  %v381_v52 = vld [vmem:[%s2211_s10 + $0x78] sm:$0xff]  ;;  %v1569_v53 = vcombine.low %v384_v41, %v388_v42  ;;  %v1801_v10 = vld [vmem:[%s2287_s12 + $0x30] sm:$0xff]  }
  0x82   : > { %812 = vmatprep.subr.bf16.mxu0 %v1558_v54  ;;  %855 = vmatprep.subr.bf16.mxu1 %v1560_v55  ;;  %v1571_v54 = vcombine.low %v385_v43, %v389_v44  ;;  %v1562_v55 = vcombine.high %v376_v49, %v380_v50  ;;  %v1564_v56 = vcombine.high %v377_v51, %v381_v52  ;;  %v1812_v21 = vld [vmem:[%s2287_s12 + $0xd8] sm:$0xff]   ;;  %v1817_v26 = vld [vmem:[%s2287_s12 + $0x10] sm:$0xff]  }
  0x83   : > { %v1818_v27 = vld [vmem:[%s2287_s12 + $0x90] sm:$0xff]  }
  0x84   : > { %1392 = vperm.xlu0 %1793, %v1384_v37  }
  0x85   : > { %813 = vmatpush1.bf16.msra.mxu0 %v1557_v60  ;;  %856 = vmatpush1.bf16.msra.mxu1 %v1559_v61  ;;  %v373_v60 = vld [vmem:[%s2211_s10 + $0x38] sm:$0xff]  ;;  %v1561_v61 = vcombine.low %v376_v49, %v380_v50 }
  0x86   : > { %814 = vmatprep.subr.bf16.mxu0 %v1550_v62  ;;  %857 = vmatprep.subr.bf16.mxu1 %v1552_v63  ;;  %v1563_v62 = vcombine.low %v377_v51, %v381_v52  ;;  %v1554_v63 = vcombine.high %v368_v57, %v372_v58  ;;  %v1556_v0 = vcombine.high %v369_v59, %v373_v60 }
  0x87   : > { %v1555_v3 = vcombine.low %v369_v59, %v373_v60 }
  0x89   : > { %815 = vmatpush1.bf16.msra.mxu0 %v1549_v5  ;;  %858 = vmatpush1.bf16.msra.mxu1 %v1551_v6  ;;  %v1796_v5 = vld [vmem:[%s2287_s12 + $0xf8] sm:$0xff]  }
  0x8a   : > { %886 = vmatprep.subr.bf16.mxu0 %v1610_v7  ;;  %929 = vmatprep.subr.bf16.mxu1 %v1612_v8  ;;  %v1797_v6 = vld [vmem:[%s2287_s12 + $0x38] sm:$0xff]   ;;  %v1799_v8 = vld [vmem:[%s2287_s12 + $0x70] sm:$0xff]  }
  0x8b   : > { %v1798_v7 = vld [vmem:[%s2287_s12 + $0xb8] sm:$0xff]  }
  0x8c   : > { %833 = vmatmul.mubr.bf16.vlgmr.msra.gmra.mxu0 %v2252_v11  ;;  %876 = vmatmul.mubr.bf16.vlgmr.msra.gmra.mxu1 %v2252_v11 }
  0x8d   : > { %887 = vmatpush1.bf16.msra.mxu0 %v1609_v14  ;;  %930 = vmatpush1.bf16.msra.mxu1 %v1611_v15  ;;  %v1805_v14 = vld [vmem:[%s2287_s12 + $0x28] sm:$0xff]  }
  0x8e   : > { %888 = vmatprep.subr.bf16.mxu0 %v1602_v16  ;;  %931 = vmatprep.subr.bf16.mxu1 %v1604_v17  ;;  %v1806_v15 = vld [vmem:[%s2287_s12 + $0xa8] sm:$0xff]   ;;  %v1807_v16 = vld [vmem:[%s2287_s12 + $0x60] sm:$0xff]  }
  0x8f   : > { %918 = vmatprep.mubr.bf16.mxu0 %v2067_v1  ;;  %961 = vmatprep.mubr.bf16.mxu1 %v2067_v1  ;;  %v1587_v1 = vcombine.low %v401_v28, %v405_v29  ;;  %v1808_v17 = vld [vmem:[%s2287_s12 + $0xe0] sm:$0xff]   ;;  %v1819_v28 = vld [vmem:[%s2287_s12 + $0x48] sm:$0xff]  }
  0x90   : > { %v1820_v29 = vld [vmem:[%s2287_s12 + $0xc8] sm:$0xff]  }
  0x91   : > { %889 = vmatpush1.bf16.msra.mxu0 %v1601_v22  ;;  %932 = vmatpush1.bf16.msra.mxu1 %v1603_v23  ;;  %v1813_v22 = vld [vmem:[%s2287_s12 + $0x18] sm:$0xff]  }
  0x92   : > { %890 = vmatprep.subr.bf16.mxu0 %v1594_v24  ;;  %933 = vmatprep.subr.bf16.mxu1 %v1596_v25  ;;  %v1814_v23 = vld [vmem:[%s2287_s12 + $0x98] sm:$0xff]   ;;  %v1815_v24 = vld [vmem:[%s2287_s12 + $0x50] sm:$0xff]  }
  0x93   : > { %v1816_v25 = vld [vmem:[%s2287_s12 + $0xd0] sm:$0xff]  }
  0x95   : > { %891 = vmatpush1.bf16.msra.mxu0 %v1593_v30  ;;  %934 = vmatpush1.bf16.msra.mxu1 %v1595_v31  ;;  %v1821_v30 = vld [vmem:[%s2287_s12 + $0x8] sm:$0xff]  }
  0x96   : > { %892 = vmatprep.subr.bf16.mxu0 %v1586_v32  ;;  %935 = vmatprep.subr.bf16.mxu1 %v1588_v33  ;;  %v1822_v31 = vld [vmem:[%s2287_s12 + $0x88] sm:$0xff]   ;;  %v1823_v32 = vld [vmem:[%s2287_s12 + $0x40] sm:$0xff]  }
  0x97   : > { %v1824_v33 = vld [vmem:[%s2287_s12 + $0xc0] sm:$0xff]  }
  0x99   : > { %893 = vmatpush1.bf16.msra.mxu0 %v1585_v38  ;;  %936 = vmatpush1.bf16.msra.mxu1 %v1587_v1  ;;  %v434_v1 = vlaneseq }
  0x9a   : > { %894 = vmatprep.subr.bf16.mxu0 %v1578_v39  ;;  %937 = vmatprep.subr.bf16.mxu1 %v1580_v40 }
  0x9b   : > { %v2330_v41 = vshrl.u32 %v434_v1, 7 }
  0x9d   : > { %895 = vmatpush1.bf16.msra.mxu0 %v1577_v45  ;;  %938 = vmatpush1.bf16.msra.mxu1 %v1579_v46  ;;  %v452_v43 = vsub.s32 4, %v2330_v41  ;;  %v460_v45 = vsub.s32 6, %v2330_v41  ;;  %v464_v49 = vsub.s32 7, %v2330_v41 }
  0x9e   : > { %896 = vmatprep.subr.bf16.mxu0 %v1570_v47  ;;  %939 = vmatprep.subr.bf16.mxu1 %v1572_v48  ;;  %v456_v47 = vsub.s32 5, %v2330_v41  ;;  %v2341_v48 = vld [vmem:[%s431_s14] sm:$0xff] }
  0x9f   : > { %v453_v50 = vrot.slane %v2341_v48, %v452_v43  ;;  %v461_v52 = vrot.slane %v2341_v48, %v460_v45 }
  0xa1   : > { %897 = vmatpush1.bf16.msra.mxu0 %v1569_v53  ;;  %940 = vmatpush1.bf16.msra.mxu1 %v1571_v54  ;;  %v457_v54 = vrot.slane %v2341_v48, %v456_v47  ;;  %v436_v47 = vsub.s32 0, %v2330_v41 }
  0xa2   : > { %898 = vmatprep.subr.bf16.mxu0 %v1562_v55  ;;  %941 = vmatprep.subr.bf16.mxu1 %v1564_v56  ;;  %v465_v56 = vrot.slane %v2341_v48, %v464_v49  ;;  %v440_v49 = vsub.s32 1, %v2330_v41 }
  0xa5   : > { %899 = vmatpush1.bf16.msra.mxu0 %v1561_v61  ;;  %942 = vmatpush1.bf16.msra.mxu1 %v1563_v62 }
  0xa6   : > { %900 = vmatprep.subr.bf16.mxu0 %v1554_v63  ;;  %943 = vmatprep.subr.bf16.mxu1 %v1556_v0 }
  0xa9   : > { %901 = vmatpush1.bf16.msra.mxu0 %v1553_v2  ;;  %944 = vmatpush1.bf16.msra.mxu1 %v1555_v3 }
  0xaa   : > { %1655 = vmatprep.subr.bf16.mxu0 %v1795_v4  ;;  %1677 = vmatprep.subr.bf16.mxu1 %v1796_v5 }
  0xac   : > { %919 = vmatmul.mubr.bf16.vlgmr.msra.gmra.mxu0 %v2252_v11  ;;  %962 = vmatmul.mubr.bf16.vlgmr.msra.gmra.mxu1 %v2252_v11  ;;  %v1802_v11 = vld [vmem:[%s2287_s12 + $0xb0] sm:$0xff]  }
  0xad   : > { %1656 = vmatpush3.bf16.msra.mxu0 %v1797_v6  ;;  %1678 = vmatpush3.bf16.msra.mxu1 %v1798_v7 }
  0xae   : > { %1657 = vmatprep.subr.bf16.mxu0 %v1799_v8  ;;  %1679 = vmatprep.subr.bf16.mxu1 %v1800_v9 }
  0xb1   : > { %1658 = vmatpush3.bf16.msra.mxu0 %v1801_v10  ;;  %1680 = vmatpush3.bf16.msra.mxu1 %v1802_v11 }
  0xb2   : > { %1659 = vmatprep.subr.bf16.mxu0 %v1803_v12  ;;  %1681 = vmatprep.subr.bf16.mxu1 %v1804_v13 }
  0xb5   : > { %1660 = vmatpush3.bf16.msra.mxu0 %v1805_v14  ;;  %1682 = vmatpush3.bf16.msra.mxu1 %v1806_v15 }
  0xb6   : > { %1661 = vmatprep.subr.bf16.mxu0 %v1807_v16  ;;  %1683 = vmatprep.subr.bf16.mxu1 %v1808_v17 }
  0xb9   : > { %1662 = vmatpush3.bf16.msra.mxu0 %v1809_v18  ;;  %1684 = vmatpush3.bf16.msra.mxu1 %v1810_v19 }
  0xba   : > { %1663 = vmatprep.subr.bf16.mxu0 %v1811_v20  ;;  %1685 = vmatprep.subr.bf16.mxu1 %v1812_v21 }
  0xbd   : > { %1664 = vmatpush3.bf16.msra.mxu0 %v1813_v22  ;;  %1686 = vmatpush3.bf16.msra.mxu1 %v1814_v23 }
  0xbe   : > { %1665 = vmatprep.subr.bf16.mxu0 %v1815_v24  ;;  %1687 = vmatprep.subr.bf16.mxu1 %v1816_v25 }
  0xc1   : > { %1666 = vmatpush3.bf16.msra.mxu0 %v1817_v26  ;;  %1688 = vmatpush3.bf16.msra.mxu1 %v1818_v27 }
  0xc2   : > { %1667 = vmatprep.subr.bf16.mxu0 %v1819_v28  ;;  %1689 = vmatprep.subr.bf16.mxu1 %v1820_v29 }
  0xc5   : > { %1668 = vmatpush3.bf16.msra.mxu0 %v1821_v30  ;;  %1690 = vmatpush3.bf16.msra.mxu1 %v1822_v31 }
  0xc6   : > { %1669 = vmatprep.subr.bf16.mxu0 %v1823_v32  ;;  %1691 = vmatprep.subr.bf16.mxu1 %v1824_v33 }
  0xc9   : > { %1670 = vmatpush3.bf16.msra.mxu0 %v1825_v34  ;;  %1692 = vmatpush3.bf16.msra.mxu1 %v1826_v35 }
 0x14c   : > { %v2323_v38 = vpop.f32.mrf.mxu0  ;;  %v2325_v39 = vpop.f32.mrf.mxu1 }
 0x14e   : > { %v2328_v40 = vpop.f32.mrf.mxu0  ;;  %v2332_v42 = vpop.f32.mrf.mxu1 }
 0x150   : > { %v2335_v44 = vpop.f32.mrf.mxu0  ;;  %v2338_v46 = vpop.f32.mrf.mxu1 }
 0x152   : > { %v2345_v51 = vpop.f32.mrf.mxu0  ;;  %v2348_v53 = vpop.f32.mrf.mxu1 }
 0x16c   : > { %v920_v55 = vpop.f32.mrf.mxu0  ;;  %v963_v58 = vpop.f32.mrf.mxu1 }
 0x16d   : > { %v2352_v57 = vadd.f32 %v920_v55, %v453_v50  ;;  %v2354_v59 = vadd.f32 %v963_v58, %v461_v52  ;;  %v441_v58 = vrot.slane %v2341_v48, %v440_v49  ;;  %v1382_v49 = vld [vmem:[#allocation11 + $0x8] sm:$0xff] }
 0x16e   : > { %v922_v60 = vpop.f32.mrf.mxu0  ;;  %v965_v63 = vpop.f32.mrf.mxu1 }
 0x16f   : > { %v972_v61 = vsub.f32 0.0, %v2352_v57  ;;  %v2357_v62 = vadd.f32 %v922_v60, %v457_v54  ;;  %v974_v0 = vsub.f32 0.0, %v2354_v59  ;;  %v2360_v2 = vadd.f32 %v965_v63, %v465_v56 }
 0x170   : > { %v924_v3 = vpop.f32.mrf.mxu0  ;;  %v967_v7 = vpop.f32.mrf.mxu1 }
 0x171   : > { %v980_v4 = vmul.f32 1.442695, %v972_v61  ;;  %v973_v5 = vsub.f32 0.0, %v2357_v62  ;;  %v2363_v6 = vadd.f32 %v924_v3, %v453_v50  ;;  %v984_v8 = vmul.f32 1.442695, %v974_v0 }
 0x172   : > { %v975_v9 = vsub.f32 0.0, %v2360_v2  ;;  %v2366_v10 = vadd.f32 %v967_v7, %v461_v52  ;;  %v926_v11 = vpop.f32.mrf.mxu0  ;;  %v969_v15 = vpop.f32.mrf.mxu1  ;;  %v444_v50 = vsub.s32 2, %v2330_v41  ;;  %v837_v7 = vadd.f32 %v2328_v40, %v441_v58 }
 0x173   : > { %1827 = vpow2.f32 %v980_v4  ;;  %v982_v12 = vmul.f32 1.442695, %v973_v5  ;;  %v976_v13 = vsub.f32 0.0, %v2363_v6  ;;  %v2369_v14 = vadd.f32 %v926_v11, %v457_v54 }
 0x174   : > { %1829 = vpow2.f32 %v984_v8  ;;  %v986_v16 = vmul.f32 1.442695, %v975_v9  ;;  %v978_v17 = vsub.f32 0.0, %v2366_v10  ;;  %v2372_v18 = vadd.f32 %v969_v15, %v465_v56 }
 0x175   : > { %1831 = vpow2.f32 %v982_v12  ;;  %v988_v19 = vmul.f32 1.442695, %v976_v13  ;;  %v977_v20 = vsub.f32 0.0, %v2369_v14  ;;  %v448_v54 = vsub.s32 3, %v2330_v41 }
 0x176   : > { %1833 = vpow2.f32 %v986_v16  ;;  %v992_v21 = vmul.f32 1.442695, %v978_v17  ;;  %v979_v22 = vsub.f32 0.0, %v2372_v18  ;;  %v437_v56 = vrot.slane %v2341_v48, %v436_v47 }
 0x177   : > { %1835 = vpow2.f32 %v988_v19  ;;  %v990_v23 = vmul.f32 1.442695, %v977_v20  ;;  %v445_v63 = vrot.slane %v2341_v48, %v444_v50  ;;  %v449_v3 = vrot.slane %v2341_v48, %v448_v54 }
 0x178   : > { %1837 = vpow2.f32 %v992_v21  ;;  %v994_v24 = vmul.f32 1.442695, %v979_v22  ;;  %v835_v5 = vadd.f32 %v2323_v38, %v437_v56  ;;  %v839_v11 = vadd.f32 %v2335_v44, %v437_v56 }
 0x179   : > { %1839 = vpow2.f32 %v990_v23  ;;  %v882_v48 = vadd.f32 %v2338_v46, %v445_v63  ;;  %v841_v38 = vadd.f32 %v2345_v51, %v441_v58  ;;  %v884_v17 = vadd.f32 %v2348_v53, %v449_v3 }
 0x17a   : > { %1841 = vpow2.f32 %v994_v24 }
 0x180   : > { %v1828_v25 = vpop.eup %1827 }
 0x181   : > { %v1830_v26 = vpop.eup %1829  ;;  %v996_v27 = vadd.f32 1.0, %v1828_v25 }
 0x182   : > { %v1832_v28 = vpop.eup %1831  ;;  %v998_v29 = vadd.f32 1.0, %v1830_v26 }
 0x183   : > { %v1834_v30 = vpop.eup %1833  ;;  %1843 = vrcp.f32 %v996_v27  ;;  %v997_v31 = vadd.f32 1.0, %v1832_v28 }
 0x184   : > { %v1836_v32 = vpop.eup %1835  ;;  %1845 = vrcp.f32 %v998_v29  ;;  %v999_v33 = vadd.f32 1.0, %v1834_v30 }
 0x185   : > { %v1838_v34 = vpop.eup %1837  ;;  %1847 = vrcp.f32 %v997_v31  ;;  %v1000_v35 = vadd.f32 1.0, %v1836_v32  ;;  %v1388_v31 = vpop.permute.xlu0 %1387 }
 0x186   : > { %v1840_v36 = vpop.eup %1839  ;;  %1849 = vrcp.f32 %v999_v33  ;;  %v1002_v37 = vadd.f32 1.0, %v1838_v34 }
 0x187   : > { %v1842_v1 = vpop.eup %1841  ;;  %1851 = vrcp.f32 %v1000_v35  ;;  %v1001_v43 = vadd.f32 1.0, %v1840_v36  ;;  %v1381_v36 = vld [vmem:[#allocation11] sm:$0xff] }
 0x188   : > { %1853 = vrcp.f32 %v1002_v37  ;;  %v1003_v45 = vadd.f32 1.0, %v1842_v1 }
 0x189   : > { %1855 = vrcp.f32 %v1001_v43  ;;  %v1393_v50 = vpop.permute.xlu0 %1392 }
 0x18a   : > { %1857 = vrcp.f32 %v1003_v45 }
 0x190   : > { %v1844_v52 = vpop.eup %1843 }
 0x191   : > { %v1846_v55 = vpop.eup %1845  ;;  %v1012_v12 = vmul.f32 %v1844_v52, %v2352_v57 }
 0x192   : > { %v1848_v60 = vpop.eup %1847  ;;  %v1014_v40 = vmul.f32 %v1846_v55, %v2354_v59 }
 0x193   : > { %v1850_v61 = vpop.eup %1849  ;;  %v1013_v8 = vmul.f32 %v1848_v60, %v2357_v62  ;;  %v1020_v46 = vmul.f32 %v1012_v12, %v835_v5 }
 0x194   : > { %v1852_v0 = vpop.eup %1851  ;;  %v1015_v13 = vmul.f32 %v1850_v61, %v2360_v2  ;;  %v878_v2 = vadd.f32 %v2325_v39, %v445_v63  ;;  %v1615_v39 = vld [vmem:[%s1099_s17] ss:$0 sm:$0xff] }
 0x195   : > { %v1854_v4 = vpop.eup %1853  ;;  %v1016_v41 = vmul.f32 %v1852_v0, %v2363_v6  ;;  %v880_v6 = vadd.f32 %v2332_v42, %v449_v3  ;;  %v1021_v19 = vmul.f32 %v1013_v8, %v837_v7 }
 0x196   : > { %v1856_v9 = vpop.eup %1855  ;;  %v1018_v15 = vmul.f32 %v1854_v4, %v2366_v10  ;;  %v1022_v22 = vmul.f32 %v1014_v40, %v878_v2 }
 0x197   : > { %v1858_v16 = vpop.eup %1857  ;;  %v1017_v62 = vmul.f32 %v1856_v9, %v2369_v14  ;;  %v1024_v44 = vmul.f32 %v1016_v41, %v839_v11  ;;  %v1023_v21 = vmul.f32 %v1015_v13, %v880_v6 }
 0x198   : > { %v1019_v57 = vmul.f32 %v1858_v16, %v2372_v18  ;;  %v1026_v10 = vmul.f32 %v1018_v15, %v882_v48 }
 0x199   : > { %v1025_v20 = vmul.f32 %v1017_v62, %v841_v38  ;;  %v1028_v23 = vpack.c.bf16 %v1024_v44, %v1020_v46 }
 0x19a   : > { %v1027_v51 = vmul.f32 %v1019_v57, %v884_v17  ;;  %v1030_v24 = vpack.c.bf16 %v1026_v10, %v1022_v22 }
 0x19b   : > { %v1029_v59 = vpack.c.bf16 %v1025_v20, %v1021_v19 }
 0x19c   : > { %v1031_v14 = vpack.c.bf16 %v1027_v51, %v1023_v21 }
 0x19d   : > { %1331 = vmatprep.mubr.bf16.mxu0 %v1029_v59 }
 0x19e   : > { %1372 = vmatprep.mubr.bf16.mxu1 %v1031_v14  ;;  %1332 = vmatmul.mubr.bf16.vlgmr.msra.gmra.mxu0 %v1028_v23 }
 0x19f   : > { %1373 = vmatmul.mubr.bf16.vlgmr.msra.gmra.mxu1 %v1030_v24 }
 0x25e   : > { %v1671_v42 = vpop.f32.mrf.mxu0 }
 0x25f   : > { %v1693_v53 = vpop.f32.mrf.mxu1 }
 0x260   : > { %v1672_v18 = vpop.f32.mrf.mxu0 }
 0x261   : > { %v1673_v25 = vadd.f32 %v1672_v18, %v1671_v42  ;;  %v1694_v26 = vpop.f32.mrf.mxu1 }
 0x262   : > { %v1674_v27 = vpop.f32.mrf.mxu0  ;;  %v1695_v29 = vadd.f32 %v1694_v26, %v1693_v53 }
 0x263   : > { %v1334_v28 = vadd.f32 %v1673_v25, %v1615_v39  ;;  %v1696_v30 = vpop.f32.mrf.mxu1 }
 0x264   : > { %v1675_v32 = vpop.f32.mrf.mxu0 }
 0x265   : > { %v1375_v33 = vadd.f32 %v1695_v29, %v1334_v28  ;;  %v1676_v34 = vadd.f32 %v1675_v32, %v1674_v27  ;;  %v1697_v35 = vpop.f32.mrf.mxu1 }
 0x266   : > { %v1698_v43 = vadd.f32 %v1697_v35, %v1696_v30 }
 0x267   : > { %v1395_v37 = vmul.f32 %v1388_v31, %v1375_v33  ;;  %v1337_v1 = vadd.f32 %v1676_v34, %v1615_v39 }
 0x269   : > { %v1397_v45 = vadd.f32 %v1395_v37, %v1381_v36  ;;  %v1378_v47 = vadd.f32 %v1698_v43, %v1337_v1 }
 0x26b   : > { %1399 = vst [vmem:[#allocation11] sm:$0xff] %v1397_v45  ;;  %v1396_v52 = vmul.f32 %v1393_v50, %v1378_v47 }
 0x26d   : > { %v1398_v54 = vadd.f32 %v1396_v52, %v1382_v49 }
 0x26f   : > { %1400 = vst [vmem:[#allocation11 + $0x8] sm:$0xff] %v1398_v54 }
 0x270   : > { %2002 = shalt.err (!%p1999_p4)
}
 0x271   : > { %s2069_s20 = smov 128   ;;  %s2070_s26 = smov 8  }
 0x272   : > { %1720 = dma.vmem_to_hbm [thread:$0]  (%p2403_p9), %s1411_s15, 256, %s2433_s6, [#allocation4], %s2069_s20, %s2069_s20, %s2070_s26  }
 0x273   : > { %2038 = dma.done.wait (%p2403_p9), [#allocation4], 256  }
 0x274   : > { %2040 = vsyncadd (%p2403_p9), [#allocation4], 4294967040 }
 0x275 PF: > { %s20_s23 = sadd.s32 1, %s2051_s23   ;;  %s2444_s21 = smov %s2047_s22 }
 0x276   : > { %p17_p3 = scmp.ge.s32.totalorder %s20_s23, 10   ;;  %s2445_s22 = smov %s2447_s19 }
 0x278   :  { %19 = sbr.rel (!%p17_p3) target bundleno = 5 (0x5), region = 102 }
 0x27d   :  { %1426 = vsyncpa [#allocation3], 1 }
 0x27e   :  { %1428 = vsyncpa [#allocation3 + $0x1], 1 }
 0x27f   :  { %1429 = vsyncpa [#allocation6], 1 }
 0x280   :  { %1430 = vsyncpa [#allocation9], 1 }
 0x281   :  { %1431 = vsyncpa [#allocation4], 1 }
 0x282   :  { %1433 = vsyncpa [#allocation4 + $0x1], 1 }

</bundles_post_ra>
